<compile_context>
chip_gen: v7x
topology: tpu7x:2x2x1
jax: 0.10.0
libtpu: 0.0.40
codegen_flags: <defaults>
</compile_context>

<pallas_src>
import functools

import jax
import jax.numpy as jnp
from jax.experimental import pallas as pl
from jax.experimental.pallas import tpu as pltpu

COMPUTE_DTYPE = jnp.bfloat16        # MXU-input dtype (accumulation is f32)
TILE_M_TARGET = 512                 # row-tile cap; budgeted for v7x's 64 MiB VMEM
MIN_ROW_TILES = 4                   # aim for >=4 grid steps (pipelining + v7x 2 TCs)
VMEM_LIMIT_BYTES = 48 * 1024 * 1024  # raise scoped-VMEM limit (v5e default = 16 MiB)


# ----------------------------------------------------------------------------
# Pallas kernel: one fused SageLayer row-tile (optionally with final fc folded)
# ----------------------------------------------------------------------------
def sage_layer_kernel(x_self_ref, x_neigh_ref, mask_ref, w_neigh_ref,
                      w_out_self_ref, w_out_pool_ref, out_ref, *, S):
    """One row-tile of a SageLayer (pooling='max', ReLU, no biases).

    x_self_ref     : (TM, F)     compute dtype
    x_neigh_ref    : (S, TM, F)  sample-major: one contiguous (TM, F) slab per sample
    mask_ref       : (TM, S)     compute dtype, values in {0, 1}
    w_neigh_ref    : (F, H)      compute dtype
    w_out_self_ref : (F, N)      [W_self | 0]   (or W_self @ fc_w[:H] when fc is folded)
    w_out_pool_ref : (H, N)      [0 | W_pool]   (or W_pool @ fc_w[H:] when fc is folded)
    out_ref        : (TM, N)
    """
    w_neigh = w_neigh_ref[...]
    mask = mask_ref[...].astype(jnp.float32)       # ReLU / mask / max in f32 (VPU)

    # Neighbor branch: one MXU push per sample; max-pool is a running maximum
    # over S contiguous aligned (TM, H) slabs -- no strided sublane gathers,
    # no explicit VMEM scratch round-trip.
    pooled = None
    for s in range(S):
        h_s = jnp.dot(x_neigh_ref[s], w_neigh,
                      preferred_element_type=jnp.float32)            # (TM, H) f32
        h_s = jnp.maximum(h_s, 0.0) * mask[:, s:s + 1]               # ReLU, then mask
        pooled = h_s if pooled is None else jnp.maximum(pooled, h_s)

    # Output projection: two MXU pushes into one f32 accumulator, single
    # lane-dense store (replaces concatenate + block-diag matmul relayout).
    acc = jnp.dot(x_self_ref[...], w_out_self_ref[...],
                  preferred_element_type=jnp.float32)
    acc = acc + jnp.dot(pooled.astype(w_out_pool_ref.dtype), w_out_pool_ref[...],
                        preferred_element_type=jnp.float32)
    out_ref[...] = acc.astype(out_ref.dtype)


# ----------------------------------------------------------------------------
# Wrapper: tiled pallas_call over rows
# ----------------------------------------------------------------------------
def _choose_tile_m(M):
    """Row tile: sublane-aligned, >= MIN_ROW_TILES tiles when M allows, <= 512."""
    if M <= 8:
        return M                               # single tile == full dim (tiling rule OK)
    tm = -(-M // MIN_ROW_TILES)                # cdiv: aim for >= MIN_ROW_TILES tiles
    tm = -(-tm // 8) * 8                       # round up to sublane multiple
    return max(8, min(TILE_M_TARGET, tm))


def sage_layer(x_self, x_neigh_sm, mask, w_neigh, w_out_self, w_out_pool, *,
               out_dtype):
    """x_self: (M, F), x_neigh_sm: (S, M, F), mask: (M, S)  ->  (M, N)."""
    M, F = x_self.shape
    S = x_neigh_sm.shape[0]
    H = w_neigh.shape[1]
    N = w_out_self.shape[1]
    TM = _choose_tile_m(M)
    grid = (pl.cdiv(M, TM),)

    flops = 2 * M * S * F * H + 2 * M * F * N + 2 * M * H * N
    bytes_accessed = (x_self.size * x_self.dtype.itemsize
                      + x_neigh_sm.size * x_neigh_sm.dtype.itemsize
                      + mask.size * mask.dtype.itemsize
                      + w_neigh.size * w_neigh.dtype.itemsize
                      + w_out_self.size * w_out_self.dtype.itemsize
                      + w_out_pool.size * w_out_pool.dtype.itemsize
                      + M * N * jnp.dtype(out_dtype).itemsize)

    return pl.pallas_call(
        functools.partial(sage_layer_kernel, S=S),
        out_shape=jax.ShapeDtypeStruct((M, N), out_dtype),
        grid=grid,
        in_specs=[
            pl.BlockSpec((TM, F), lambda i: (i, 0)),
            pl.BlockSpec((S, TM, F), lambda i: (0, i, 0)),
            pl.BlockSpec((TM, S), lambda i: (i, 0)),
            pl.BlockSpec((F, H), lambda i: (0, 0)),        # weights stay resident:
            pl.BlockSpec((F, N), lambda i: (0, 0)),        # constant block index ->
            pl.BlockSpec((H, N), lambda i: (0, 0)),        # no re-DMA across steps
        ],
        out_specs=pl.BlockSpec((TM, N), lambda i: (i, 0)),
        compiler_params=pltpu.CompilerParams(
            dimension_semantics=("parallel",),
            vmem_limit_bytes=VMEM_LIMIT_BYTES),
        cost_estimate=pl.CostEstimate(flops=flops, transcendentals=0,
                                      bytes_accessed=bytes_accessed),
    )(x_self, x_neigh_sm, mask, w_neigh, w_out_self, w_out_pool)


# ----------------------------------------------------------------------------
# GraphSage forward (jitted glue: layouts, weight fusion, j-subproblem merging)
# ----------------------------------------------------------------------------
def make_graphsage_forward(expansion_rates, layer_input_sizes, inner_feature_size):
    depth = len(expansion_rates)
    H = inner_feature_size

    def forward(hier_embs, masks, layer_weights, fc_w):
        # Cast hierarchical embeddings to the compute dtype once.
        current = [e.astype(COMPUTE_DTYPE) for e in hier_embs]

        for i in range(depth):
            w_self, w_neigh, w_pool = layer_weights[i]
            F = layer_input_sizes[i]
            w_neigh_c = w_neigh.astype(COMPUTE_DTYPE)

            if i == depth - 1:
                # Final layer: only j = 0.  Fold the output fc into the output
                # projection (in f32, then cast) -- exact, no nonlinearity between.
                w_out_self = (w_self @ fc_w[:H]).astype(COMPUTE_DTYPE)   # (F, N_out)
                w_out_pool = (w_pool @ fc_w[H:]).astype(COMPUTE_DTYPE)   # (H, N_out)
                B, C, _ = current[0].shape
                S = expansion_rates[0]
                M = B * C
                x_self = current[0].reshape(M, F)
                x_neigh = current[1].reshape(M, S, F).transpose(1, 0, 2)  # (S, M, F)
                mask = masks[0].reshape(M, S).astype(COMPUTE_DTYPE)
                return sage_layer(x_self, x_neigh, mask, w_neigh_c,
                                  w_out_self, w_out_pool, out_dtype=jnp.float32)

            # Intermediate layer: split the block-diagonal output weight into
            # the x_self and pooled contributions (two MXU pushes in-kernel).
            w_out_self = jnp.concatenate(
                [w_self, jnp.zeros((F, H), w_self.dtype)], axis=1
            ).astype(COMPUTE_DTYPE)                                       # (F, 2H)
            w_out_pool = jnp.concatenate(
                [jnp.zeros((H, H), w_pool.dtype), w_pool], axis=1
            ).astype(COMPUTE_DTYPE)                                       # (H, 2H)

            # Merge the (depth - i) independent j-subproblems that share the
            # same expansion rate S into one pallas_call (shared weights,
            # longer grid, amortized launch / pipeline warm-up).
            groups = {}
            for j in range(depth - i):
                groups.setdefault(expansion_rates[j], []).append(j)

            new_states = {}
            for S, js in groups.items():
                metas, xs, xn, xm = [], [], [], []
                for j in js:
                    B, C, _ = current[j].shape
                    Mj = B * C
                    metas.append((j, B, C, Mj))
                    xs.append(current[j].reshape(Mj, F))
                    xn.append(current[j + 1].reshape(Mj, S, F).transpose(1, 0, 2))
                    xm.append(masks[j].reshape(Mj, S).astype(COMPUTE_DTYPE))
                x_self = xs[0] if len(js) == 1 else jnp.concatenate(xs, axis=0)
                x_neigh = xn[0] if len(js) == 1 else jnp.concatenate(xn, axis=1)
                mask = xm[0] if len(js) == 1 else jnp.concatenate(xm, axis=0)

                out = sage_layer(x_self, x_neigh, mask, w_neigh_c,
                                 w_out_self, w_out_pool, out_dtype=COMPUTE_DTYPE)

                off = 0
                for (j, B, C, Mj) in metas:
                    new_states[j] = out[off:off + Mj].reshape(B, C, 2 * H)
                    off += Mj
            for j, v in new_states.items():
                current[j] = v

    return jax.jit(forward)


# ----------------------------------------------------------------------------
# Pure-JAX f32 reference (original module semantics)
# ----------------------------------------------------------------------------
def _graphsage_ref(hier_embs, masks, layer_weights, fc_w,
                   expansion_rates, layer_input_sizes):
    depth = len(expansion_rates)
    cum = [1]
    for r in expansion_rates[:-1]:
        cum.append(cum[-1] * r)
    current = list(hier_embs)
    for i in range(depth):
        w_self, w_neigh, w_pool = layer_weights[i]
        F = layer_input_sizes[i]
        for j in range(depth - i):
            x_self = current[j]
            x_neigh = current[j + 1].reshape(-1, cum[j], expansion_rates[j], F)
            mask = masks[j].reshape(-1, cum[j], expansion_rates[j], 1)
            h_self = x_self @ w_self
            h_neigh = jnp.maximum(x_neigh @ w_neigh, 0.0) * mask
            h_pool = jnp.max(h_neigh, axis=-2) @ w_pool
            current[j] = jnp.concatenate([h_self, h_pool], axis=-1)
    return current[0][:, 0] @ fc_w


# ----------------------------------------------------------------------------
# main
# ----------------------------------------------------------------------------
if __name__ == "__main__":
    batch = 2
    expansion_rates = [3, 2]              # depth = 2
    input_feature_size = 32
    inner_feature_size = 32
    output_feature_size = 16

    depth = len(expansion_rates)
    H = inner_feature_size
    layer_input_sizes = [input_feature_size if i == 0 else 2 * H
                         for i in range(depth)]
    cum_ext = [1]
    for r in expansion_rates:
        cum_ext.append(cum_ext[-1] * r)     # [1, 3, 6]

    key = jax.random.PRNGKey(0)
    keys = jax.random.split(key, 16)
    ki = iter(keys)

    layer_weights = []
    for i in range(depth):
        F = layer_input_sizes[i]
        w_self = 0.1 * jax.random.normal(next(ki), (F, H), jnp.float32)
        w_neigh = 0.1 * jax.random.normal(next(ki), (F, H), jnp.float32)
        w_pool = 0.1 * jax.random.normal(next(ki), (H, H), jnp.float32)
        layer_weights.append((w_self, w_neigh, w_pool))
    fc_w = 0.1 * jax.random.normal(next(ki), (2 * H, output_feature_size),
                                   jnp.float32)

    hier_embs = [
        jax.random.normal(next(ki), (batch, cum_ext[j], input_feature_size),
                          jnp.float32)
        for j in range(depth + 1)
    ]
    masks = [
        (jax.random.uniform(next(ki), (batch, cum_ext[j + 1], 1)) > 0.3
         ).astype(jnp.float32)
        for j in range(depth)
    ]

    forward = make_graphsage_forward(expansion_rates, layer_input_sizes,
                                     inner_feature_size)
    out = jax.block_until_ready(forward(hier_embs, masks, layer_weights, fc_w))

    ref = _graphsage_ref(hier_embs, masks, layer_weights, fc_w,
                         expansion_rates, layer_input_sizes)
    assert out.shape == (batch, output_feature_size)
    # Tolerance loosened vs the pure-f32 reference because matmul inputs are bf16.
    assert jnp.allclose(out, ref, atol=2e-2, rtol=2e-2), "mismatch vs reference"

    print("KERNEL_OK")
</pallas_src>

<mosaic_0001>
module attributes {stable_mosaic.version = 11 : i64} {
  func.func @sage_layer_kernel(%arg0: i32, %arg1: memref<2x32xbf16, #tpu.memory_space<vmem>>, %arg2: memref<3x2x32xbf16, #tpu.memory_space<vmem>>, %arg3: memref<2x3xbf16, #tpu.memory_space<vmem>>, %arg4: memref<32x32xbf16, #tpu.memory_space<vmem>>, %arg5: memref<32x64xbf16, #tpu.memory_space<vmem>>, %arg6: memref<32x64xbf16, #tpu.memory_space<vmem>>, %arg7: memref<2x64xbf16, #tpu.memory_space<vmem>>) attributes {dimension_semantics = [#tpu.dimension_semantics<parallel>], iteration_bounds = array<i64: 1>, scalar_prefetch = 0 : i64, scratch_operands = 0 : i64, tpu.core_type = #tpu.core_type<tc>, window_params = [{transform_indices = @transform_0, window_bounds = array<i64: 2, 32>}, {transform_indices = @transform_1, window_bounds = array<i64: 3, 2, 32>}, {transform_indices = @transform_2, window_bounds = array<i64: 2, 3>}, {pipeline_mode = #tpu.pipeline_mode<synchronous>, transform_indices = @transform_3, window_bounds = array<i64: 32, 32>}, {pipeline_mode = #tpu.pipeline_mode<synchronous>, transform_indices = @transform_4, window_bounds = array<i64: 32, 64>}, {pipeline_mode = #tpu.pipeline_mode<synchronous>, transform_indices = @transform_5, window_bounds = array<i64: 32, 64>}, {transform_indices = @transform_6, window_bounds = array<i64: 2, 64>}]} {
    %c0 = arith.constant 0 : index
    %c0_0 = arith.constant 0 : index
    %0 = vector.load %arg4[%c0, %c0_0] : memref<32x32xbf16, #tpu.memory_space<vmem>>, vector<32x32xbf16>
    %c0_1 = arith.constant 0 : index
    %c0_2 = arith.constant 0 : index
    %1 = vector.load %arg3[%c0_1, %c0_2] : memref<2x3xbf16, #tpu.memory_space<vmem>>, vector<2x3xbf16>
    %2 = arith.extf %1 : vector<2x3xbf16> to vector<2x3xf32>
    %c0_3 = arith.constant 0 : index
    %c0_4 = arith.constant 0 : index
    %c0_5 = arith.constant 0 : index
    %3 = vector.load %arg2[%c0_3, %c0_4, %c0_5] : memref<3x2x32xbf16, #tpu.memory_space<vmem>>, vector<1x2x32xbf16>
    %4 = vector.shape_cast %3 : vector<1x2x32xbf16> to vector<2x32xbf16>
    %cst = arith.constant dense<0.000000e+00> : vector<2x32xf32>
    %5 = tpu.matmul %4, %0, %cst {dimension_numbers = #tpu.dot_dimension_numbers<[1], [0], [0], [1], [0, 0, 1, 1], [], []>} : vector<2x32xbf16>, vector<32x32xbf16>, vector<2x32xf32> -> vector<2x32xf32>
    %cst_6 = arith.constant 0.000000e+00 : f32
    %6 = vector.broadcast %cst_6 : f32 to vector<2x32xf32>
    %7 = arith.maximumf %5, %6 : vector<2x32xf32>
    %8 = vector.extract_strided_slice %2 {offsets = [0, 0], sizes = [2, 1], strides = [1, 1]} : vector<2x3xf32> to vector<2x1xf32>
    %9 = vector.broadcast %8 : vector<2x1xf32> to vector<2x32xf32>
    %10 = arith.mulf %7, %9 : vector<2x32xf32>
    %c1 = arith.constant 1 : index
    %c0_7 = arith.constant 0 : index
    %c0_8 = arith.constant 0 : index
    %11 = vector.load %arg2[%c1, %c0_7, %c0_8] : memref<3x2x32xbf16, #tpu.memory_space<vmem>>, vector<1x2x32xbf16>
    %12 = vector.shape_cast %11 : vector<1x2x32xbf16> to vector<2x32xbf16>
    %cst_9 = arith.constant dense<0.000000e+00> : vector<2x32xf32>
    %13 = tpu.matmul %12, %0, %cst_9 {dimension_numbers = #tpu.dot_dimension_numbers<[1], [0], [0], [1], [0, 0, 1, 1], [], []>} : vector<2x32xbf16>, vector<32x32xbf16>, vector<2x32xf32> -> vector<2x32xf32>
    %cst_10 = arith.constant 0.000000e+00 : f32
    %14 = vector.broadcast %cst_10 : f32 to vector<2x32xf32>
    %15 = arith.maximumf %13, %14 : vector<2x32xf32>
    %16 = vector.extract_strided_slice %2 {offsets = [0, 1], sizes = [2, 1], strides = [1, 1]} : vector<2x3xf32> to vector<2x1xf32>
    %17 = vector.broadcast %16 : vector<2x1xf32> to vector<2x32xf32>
    %18 = arith.mulf %15, %17 : vector<2x32xf32>
    %19 = arith.maximumf %10, %18 : vector<2x32xf32>
    %c2 = arith.constant 2 : index
    %c0_11 = arith.constant 0 : index
    %c0_12 = arith.constant 0 : index
    %20 = vector.load %arg2[%c2, %c0_11, %c0_12] : memref<3x2x32xbf16, #tpu.memory_space<vmem>>, vector<1x2x32xbf16>
    %21 = vector.shape_cast %20 : vector<1x2x32xbf16> to vector<2x32xbf16>
    %cst_13 = arith.constant dense<0.000000e+00> : vector<2x32xf32>
    %22 = tpu.matmul %21, %0, %cst_13 {dimension_numbers = #tpu.dot_dimension_numbers<[1], [0], [0], [1], [0, 0, 1, 1], [], []>} : vector<2x32xbf16>, vector<32x32xbf16>, vector<2x32xf32> -> vector<2x32xf32>
    %cst_14 = arith.constant 0.000000e+00 : f32
    %23 = vector.broadcast %cst_14 : f32 to vector<2x32xf32>
    %24 = arith.maximumf %22, %23 : vector<2x32xf32>
    %25 = vector.extract_strided_slice %2 {offsets = [0, 2], sizes = [2, 1], strides = [1, 1]} : vector<2x3xf32> to vector<2x1xf32>
    %26 = vector.broadcast %25 : vector<2x1xf32> to vector<2x32xf32>
    %27 = arith.mulf %24, %26 : vector<2x32xf32>
    %28 = arith.maximumf %19, %27 : vector<2x32xf32>
    %c0_15 = arith.constant 0 : index
    %c0_16 = arith.constant 0 : index
    %29 = vector.load %arg1[%c0_15, %c0_16] : memref<2x32xbf16, #tpu.memory_space<vmem>>, vector<2x32xbf16>
    %c0_17 = arith.constant 0 : index
    %c0_18 = arith.constant 0 : index
    %30 = vector.load %arg5[%c0_17, %c0_18] : memref<32x64xbf16, #tpu.memory_space<vmem>>, vector<32x64xbf16>
    %cst_19 = arith.constant dense<0.000000e+00> : vector<2x64xf32>
    %31 = tpu.matmul %29, %30, %cst_19 {dimension_numbers = #tpu.dot_dimension_numbers<[1], [0], [0], [1], [0, 0, 1, 1], [], []>} : vector<2x32xbf16>, vector<32x64xbf16>, vector<2x64xf32> -> vector<2x64xf32>
    %32 = arith.truncf %28 : vector<2x32xf32> to vector<2x32xbf16>
    %c0_20 = arith.constant 0 : index
    %c0_21 = arith.constant 0 : index
    %33 = vector.load %arg6[%c0_20, %c0_21] : memref<32x64xbf16, #tpu.memory_space<vmem>>, vector<32x64xbf16>
    %cst_22 = arith.constant dense<0.000000e+00> : vector<2x64xf32>
    %34 = tpu.matmul %32, %33, %cst_22 {dimension_numbers = #tpu.dot_dimension_numbers<[1], [0], [0], [1], [0, 0, 1, 1], [], []>} : vector<2x32xbf16>, vector<32x64xbf16>, vector<2x64xf32> -> vector<2x64xf32>
    %35 = arith.addf %31, %34 : vector<2x64xf32>
    %36 = arith.truncf %35 : vector<2x64xf32> to vector<2x64xbf16>
    %c0_23 = arith.constant 0 : index
    %c0_24 = arith.constant 0 : index
    %37 = vector.load %arg7[%c0_23, %c0_24] : memref<2x64xbf16, #tpu.memory_space<vmem>>, vector<2x64xbf16>
    tpu.vector_store %arg7[%c0_23, %c0_24], %36 {strides = array<i32>} : memref<2x64xbf16, #tpu.memory_space<vmem>>, vector<2x64xbf16>,
    return
  }
  func.func @transform_0(%arg0: i32) -> (i32, i32) {
    %c0_i32 = arith.constant 0 : i32
    %c0_i32_0 = arith.constant 0 : i32
    return %arg0, %c0_i32 : i32, i32
  }
  func.func @transform_1(%arg0: i32) -> (i32, i32, i32) {
    %c0_i32 = arith.constant 0 : i32
    %c0_i32_0 = arith.constant 0 : i32
    %c0_i32_1 = arith.constant 0 : i32
    return %c0_i32, %arg0, %c0_i32_0 : i32, i32, i32
  }
  func.func @transform_2(%arg0: i32) -> (i32, i32) {
    %c0_i32 = arith.constant 0 : i32
    %c0_i32_0 = arith.constant 0 : i32
    return %arg0, %c0_i32 : i32, i32
  }
  func.func @transform_3(%arg0: i32) -> (i32, i32) {
    %c0_i32 = arith.constant 0 : i32
    %c0_i32_0 = arith.constant 0 : i32
    %c0_i32_1 = arith.constant 0 : i32
    return %c0_i32, %c0_i32_0 : i32, i32
  }
  func.func @transform_4(%arg0: i32) -> (i32, i32) {
    %c0_i32 = arith.constant 0 : i32
    %c0_i32_0 = arith.constant 0 : i32
    %c0_i32_1 = arith.constant 0 : i32
    return %c0_i32, %c0_i32_0 : i32, i32
  }
  func.func @transform_5(%arg0: i32) -> (i32, i32) {
    %c0_i32 = arith.constant 0 : i32
    %c0_i32_0 = arith.constant 0 : i32
    %c0_i32_1 = arith.constant 0 : i32
    return %c0_i32, %c0_i32_0 : i32, i32
  }
  func.func @transform_6(%arg0: i32) -> (i32, i32) {
    %c0_i32 = arith.constant 0 : i32
    %c0_i32_0 = arith.constant 0 : i32
    return %arg0, %c0_i32 : i32, i32
  }
}

module attributes {stable_mosaic.version = 11 : i64} {
  func.func @sage_layer_kernel(%arg0: i32, %arg1: memref<6x32xbf16, #tpu.memory_space<vmem>>, %arg2: memref<2x6x32xbf16, #tpu.memory_space<vmem>>, %arg3: memref<6x2xbf16, #tpu.memory_space<vmem>>, %arg4: memref<32x32xbf16, #tpu.memory_space<vmem>>, %arg5: memref<32x64xbf16, #tpu.memory_space<vmem>>, %arg6: memref<32x64xbf16, #tpu.memory_space<vmem>>, %arg7: memref<6x64xbf16, #tpu.memory_space<vmem>>) attributes {dimension_semantics = [#tpu.dimension_semantics<parallel>], iteration_bounds = array<i64: 1>, scalar_prefetch = 0 : i64, scratch_operands = 0 : i64, tpu.core_type = #tpu.core_type<tc>, window_params = [{transform_indices = @transform_0, window_bounds = array<i64: 6, 32>}, {transform_indices = @transform_1, window_bounds = array<i64: 2, 6, 32>}, {transform_indices = @transform_2, window_bounds = array<i64: 6, 2>}, {pipeline_mode = #tpu.pipeline_mode<synchronous>, transform_indices = @transform_3, window_bounds = array<i64: 32, 32>}, {pipeline_mode = #tpu.pipeline_mode<synchronous>, transform_indices = @transform_4, window_bounds = array<i64: 32, 64>}, {pipeline_mode = #tpu.pipeline_mode<synchronous>, transform_indices = @transform_5, window_bounds = array<i64: 32, 64>}, {transform_indices = @transform_6, window_bounds = array<i64: 6, 64>}]} {
    %c0 = arith.constant 0 : index
    %c0_0 = arith.constant 0 : index
    %0 = vector.load %arg4[%c0, %c0_0] : memref<32x32xbf16, #tpu.memory_space<vmem>>, vector<32x32xbf16>
    %c0_1 = arith.constant 0 : index
    %c0_2 = arith.constant 0 : index
    %1 = vector.load %arg3[%c0_1, %c0_2] : memref<6x2xbf16, #tpu.memory_space<vmem>>, vector<6x2xbf16>
    %2 = arith.extf %1 : vector<6x2xbf16> to vector<6x2xf32>
    %c0_3 = arith.constant 0 : index
    %c0_4 = arith.constant 0 : index
    %c0_5 = arith.constant 0 : index
    %3 = vector.load %arg2[%c0_3, %c0_4, %c0_5] : memref<2x6x32xbf16, #tpu.memory_space<vmem>>, vector<1x6x32xbf16>
    %4 = vector.shape_cast %3 : vector<1x6x32xbf16> to vector<6x32xbf16>
    %cst = arith.constant dense<0.000000e+00> : vector<6x32xf32>
    %5 = tpu.matmul %4, %0, %cst {dimension_numbers = #tpu.dot_dimension_numbers<[1], [0], [0], [1], [0, 0, 1, 1], [], []>} : vector<6x32xbf16>, vector<32x32xbf16>, vector<6x32xf32> -> vector<6x32xf32>
    %cst_6 = arith.constant 0.000000e+00 : f32
    %6 = vector.broadcast %cst_6 : f32 to vector<6x32xf32>
    %7 = arith.maximumf %5, %6 : vector<6x32xf32>
    %8 = vector.extract_strided_slice %2 {offsets = [0, 0], sizes = [6, 1], strides = [1, 1]} : vector<6x2xf32> to vector<6x1xf32>
    %9 = vector.broadcast %8 : vector<6x1xf32> to vector<6x32xf32>
    %10 = arith.mulf %7, %9 : vector<6x32xf32>
    %c1 = arith.constant 1 : index
    %c0_7 = arith.constant 0 : index
    %c0_8 = arith.constant 0 : index
    %11 = vector.load %arg2[%c1, %c0_7, %c0_8] : memref<2x6x32xbf16, #tpu.memory_space<vmem>>, vector<1x6x32xbf16>
    %12 = vector.shape_cast %11 : vector<1x6x32xbf16> to vector<6x32xbf16>
    %cst_9 = arith.constant dense<0.000000e+00> : vector<6x32xf32>
    %13 = tpu.matmul %12, %0, %cst_9 {dimension_numbers = #tpu.dot_dimension_numbers<[1], [0], [0], [1], [0, 0, 1, 1], [], []>} : vector<6x32xbf16>, vector<32x32xbf16>, vector<6x32xf32> -> vector<6x32xf32>
    %cst_10 = arith.constant 0.000000e+00 : f32
    %14 = vector.broadcast %cst_10 : f32 to vector<6x32xf32>
    %15 = arith.maximumf %13, %14 : vector<6x32xf32>
    %16 = vector.extract_strided_slice %2 {offsets = [0, 1], sizes = [6, 1], strides = [1, 1]} : vector<6x2xf32> to vector<6x1xf32>
    %17 = vector.broadcast %16 : vector<6x1xf32> to vector<6x32xf32>
    %18 = arith.mulf %15, %17 : vector<6x32xf32>
    %19 = arith.maximumf %10, %18 : vector<6x32xf32>
    %c0_11 = arith.constant 0 : index
    %c0_12 = arith.constant 0 : index
    %20 = vector.load %arg1[%c0_11, %c0_12] : memref<6x32xbf16, #tpu.memory_space<vmem>>, vector<6x32xbf16>
    %c0_13 = arith.constant 0 : index
    %c0_14 = arith.constant 0 : index
    %21 = vector.load %arg5[%c0_13, %c0_14] : memref<32x64xbf16, #tpu.memory_space<vmem>>, vector<32x64xbf16>
    %cst_15 = arith.constant dense<0.000000e+00> : vector<6x64xf32>
    %22 = tpu.matmul %20, %21, %cst_15 {dimension_numbers = #tpu.dot_dimension_numbers<[1], [0], [0], [1], [0, 0, 1, 1], [], []>} : vector<6x32xbf16>, vector<32x64xbf16>, vector<6x64xf32> -> vector<6x64xf32>
    %23 = arith.truncf %19 : vector<6x32xf32> to vector<6x32xbf16>
    %c0_16 = arith.constant 0 : index
    %c0_17 = arith.constant 0 : index
    %24 = vector.load %arg6[%c0_16, %c0_17] : memref<32x64xbf16, #tpu.memory_space<vmem>>, vector<32x64xbf16>
    %cst_18 = arith.constant dense<0.000000e+00> : vector<6x64xf32>
    %25 = tpu.matmul %23, %24, %cst_18 {dimension_numbers = #tpu.dot_dimension_numbers<[1], [0], [0], [1], [0, 0, 1, 1], [], []>} : vector<6x32xbf16>, vector<32x64xbf16>, vector<6x64xf32> -> vector<6x64xf32>
    %26 = arith.addf %22, %25 : vector<6x64xf32>
    %27 = arith.truncf %26 : vector<6x64xf32> to vector<6x64xbf16>
    %c0_19 = arith.constant 0 : index
    %c0_20 = arith.constant 0 : index
    %28 = vector.load %arg7[%c0_19, %c0_20] : memref<6x64xbf16, #tpu.memory_space<vmem>>, vector<6x64xbf16>
    tpu.vector_store %arg7[%c0_19, %c0_20], %27 {strides = array<i32>} : memref<6x64xbf16, #tpu.memory_space<vmem>>, vector<6x64xbf16>,
    return
  }
  func.func @transform_0(%arg0: i32) -> (i32, i32) {
    %c0_i32 = arith.constant 0 : i32
    %c0_i32_0 = arith.constant 0 : i32
    return %arg0, %c0_i32 : i32, i32
  }
  func.func @transform_1(%arg0: i32) -> (i32, i32, i32) {
    %c0_i32 = arith.constant 0 : i32
    %c0_i32_0 = arith.constant 0 : i32
    %c0_i32_1 = arith.constant 0 : i32
    return %c0_i32, %arg0, %c0_i32_0 : i32, i32, i32
  }
  func.func @transform_2(%arg0: i32) -> (i32, i32) {
    %c0_i32 = arith.constant 0 : i32
    %c0_i32_0 = arith.constant 0 : i32
    return %arg0, %c0_i32 : i32, i32
  }
  func.func @transform_3(%arg0: i32) -> (i32, i32) {
    %c0_i32 = arith.constant 0 : i32
    %c0_i32_0 = arith.constant 0 : i32
    %c0_i32_1 = arith.constant 0 : i32
    return %c0_i32, %c0_i32_0 : i32, i32
  }
  func.func @transform_4(%arg0: i32) -> (i32, i32) {
    %c0_i32 = arith.constant 0 : i32
    %c0_i32_0 = arith.constant 0 : i32
    %c0_i32_1 = arith.constant 0 : i32
    return %c0_i32, %c0_i32_0 : i32, i32
  }
  func.func @transform_5(%arg0: i32) -> (i32, i32) {
    %c0_i32 = arith.constant 0 : i32
    %c0_i32_0 = arith.constant 0 : i32
    %c0_i32_1 = arith.constant 0 : i32
    return %c0_i32, %c0_i32_0 : i32, i32
  }
  func.func @transform_6(%arg0: i32) -> (i32, i32) {
    %c0_i32 = arith.constant 0 : i32
    %c0_i32_0 = arith.constant 0 : i32
    return %arg0, %c0_i32 : i32, i32
  }
}

module attributes {stable_mosaic.version = 11 : i64} {
  func.func @sage_layer_kernel(%arg0: i32, %arg1: memref<2x64xbf16, #tpu.memory_space<vmem>>, %arg2: memref<3x2x64xbf16, #tpu.memory_space<vmem>>, %arg3: memref<2x3xbf16, #tpu.memory_space<vmem>>, %arg4: memref<64x32xbf16, #tpu.memory_space<vmem>>, %arg5: memref<64x16xbf16, #tpu.memory_space<vmem>>, %arg6: memref<32x16xbf16, #tpu.memory_space<vmem>>, %arg7: memref<2x16xf32, #tpu.memory_space<vmem>>) attributes {dimension_semantics = [#tpu.dimension_semantics<parallel>], iteration_bounds = array<i64: 1>, scalar_prefetch = 0 : i64, scratch_operands = 0 : i64, tpu.core_type = #tpu.core_type<tc>, window_params = [{transform_indices = @transform_0, window_bounds = array<i64: 2, 64>}, {transform_indices = @transform_1, window_bounds = array<i64: 3, 2, 64>}, {transform_indices = @transform_2, window_bounds = array<i64: 2, 3>}, {pipeline_mode = #tpu.pipeline_mode<synchronous>, transform_indices = @transform_3, window_bounds = array<i64: 64, 32>}, {pipeline_mode = #tpu.pipeline_mode<synchronous>, transform_indices = @transform_4, window_bounds = array<i64: 64, 16>}, {pipeline_mode = #tpu.pipeline_mode<synchronous>, transform_indices = @transform_5, window_bounds = array<i64: 32, 16>}, {transform_indices = @transform_6, window_bounds = array<i64: 2, 16>}]} {
    %c0 = arith.constant 0 : index
    %c0_0 = arith.constant 0 : index
    %0 = vector.load %arg4[%c0, %c0_0] : memref<64x32xbf16, #tpu.memory_space<vmem>>, vector<64x32xbf16>
    %c0_1 = arith.constant 0 : index
    %c0_2 = arith.constant 0 : index
    %1 = vector.load %arg3[%c0_1, %c0_2] : memref<2x3xbf16, #tpu.memory_space<vmem>>, vector<2x3xbf16>
    %2 = arith.extf %1 : vector<2x3xbf16> to vector<2x3xf32>
    %c0_3 = arith.constant 0 : index
    %c0_4 = arith.constant 0 : index
    %c0_5 = arith.constant 0 : index
    %3 = vector.load %arg2[%c0_3, %c0_4, %c0_5] : memref<3x2x64xbf16, #tpu.memory_space<vmem>>, vector<1x2x64xbf16>
    %4 = vector.shape_cast %3 : vector<1x2x64xbf16> to vector<2x64xbf16>
    %cst = arith.constant dense<0.000000e+00> : vector<2x32xf32>
    %5 = tpu.matmul %4, %0, %cst {dimension_numbers = #tpu.dot_dimension_numbers<[1], [0], [0], [1], [0, 0, 1, 1], [], []>} : vector<2x64xbf16>, vector<64x32xbf16>, vector<2x32xf32> -> vector<2x32xf32>
    %cst_6 = arith.constant 0.000000e+00 : f32
    %6 = vector.broadcast %cst_6 : f32 to vector<2x32xf32>
    %7 = arith.maximumf %5, %6 : vector<2x32xf32>
    %8 = vector.extract_strided_slice %2 {offsets = [0, 0], sizes = [2, 1], strides = [1, 1]} : vector<2x3xf32> to vector<2x1xf32>
    %9 = vector.broadcast %8 : vector<2x1xf32> to vector<2x32xf32>
    %10 = arith.mulf %7, %9 : vector<2x32xf32>
    %c1 = arith.constant 1 : index
    %c0_7 = arith.constant 0 : index
    %c0_8 = arith.constant 0 : index
    %11 = vector.load %arg2[%c1, %c0_7, %c0_8] : memref<3x2x64xbf16, #tpu.memory_space<vmem>>, vector<1x2x64xbf16>
    %12 = vector.shape_cast %11 : vector<1x2x64xbf16> to vector<2x64xbf16>
    %cst_9 = arith.constant dense<0.000000e+00> : vector<2x32xf32>
    %13 = tpu.matmul %12, %0, %cst_9 {dimension_numbers = #tpu.dot_dimension_numbers<[1], [0], [0], [1], [0, 0, 1, 1], [], []>} : vector<2x64xbf16>, vector<64x32xbf16>, vector<2x32xf32> -> vector<2x32xf32>
    %cst_10 = arith.constant 0.000000e+00 : f32
    %14 = vector.broadcast %cst_10 : f32 to vector<2x32xf32>
    %15 = arith.maximumf %13, %14 : vector<2x32xf32>
    %16 = vector.extract_strided_slice %2 {offsets = [0, 1], sizes = [2, 1], strides = [1, 1]} : vector<2x3xf32> to vector<2x1xf32>
    %17 = vector.broadcast %16 : vector<2x1xf32> to vector<2x32xf32>
    %18 = arith.mulf %15, %17 : vector<2x32xf32>
    %19 = arith.maximumf %10, %18 : vector<2x32xf32>
    %c2 = arith.constant 2 : index
    %c0_11 = arith.constant 0 : index
    %c0_12 = arith.constant 0 : index
    %20 = vector.load %arg2[%c2, %c0_11, %c0_12] : memref<3x2x64xbf16, #tpu.memory_space<vmem>>, vector<1x2x64xbf16>
    %21 = vector.shape_cast %20 : vector<1x2x64xbf16> to vector<2x64xbf16>
    %cst_13 = arith.constant dense<0.000000e+00> : vector<2x32xf32>
    %22 = tpu.matmul %21, %0, %cst_13 {dimension_numbers = #tpu.dot_dimension_numbers<[1], [0], [0], [1], [0, 0, 1, 1], [], []>} : vector<2x64xbf16>, vector<64x32xbf16>, vector<2x32xf32> -> vector<2x32xf32>
    %cst_14 = arith.constant 0.000000e+00 : f32
    %23 = vector.broadcast %cst_14 : f32 to vector<2x32xf32>
    %24 = arith.maximumf %22, %23 : vector<2x32xf32>
    %25 = vector.extract_strided_slice %2 {offsets = [0, 2], sizes = [2, 1], strides = [1, 1]} : vector<2x3xf32> to vector<2x1xf32>
    %26 = vector.broadcast %25 : vector<2x1xf32> to vector<2x32xf32>
    %27 = arith.mulf %24, %26 : vector<2x32xf32>
    %28 = arith.maximumf %19, %27 : vector<2x32xf32>
    %c0_15 = arith.constant 0 : index
    %c0_16 = arith.constant 0 : index
    %29 = vector.load %arg1[%c0_15, %c0_16] : memref<2x64xbf16, #tpu.memory_space<vmem>>, vector<2x64xbf16>
    %c0_17 = arith.constant 0 : index
    %c0_18 = arith.constant 0 : index
    %30 = vector.load %arg5[%c0_17, %c0_18] : memref<64x16xbf16, #tpu.memory_space<vmem>>, vector<64x16xbf16>
    %cst_19 = arith.constant dense<0.000000e+00> : vector<2x16xf32>
    %31 = tpu.matmul %29, %30, %cst_19 {dimension_numbers = #tpu.dot_dimension_numbers<[1], [0], [0], [1], [0, 0, 1, 1], [], []>} : vector<2x64xbf16>, vector<64x16xbf16>, vector<2x16xf32> -> vector<2x16xf32>
    %32 = arith.truncf %28 : vector<2x32xf32> to vector<2x32xbf16>
    %c0_20 = arith.constant 0 : index
    %c0_21 = arith.constant 0 : index
    %33 = vector.load %arg6[%c0_20, %c0_21] : memref<32x16xbf16, #tpu.memory_space<vmem>>, vector<32x16xbf16>
    %cst_22 = arith.constant dense<0.000000e+00> : vector<2x16xf32>
    %34 = tpu.matmul %32, %33, %cst_22 {dimension_numbers = #tpu.dot_dimension_numbers<[1], [0], [0], [1], [0, 0, 1, 1], [], []>} : vector<2x32xbf16>, vector<32x16xbf16>, vector<2x16xf32> -> vector<2x16xf32>
    %35 = arith.addf %31, %34 : vector<2x16xf32>
    %c0_23 = arith.constant 0 : index
    %c0_24 = arith.constant 0 : index
    %36 = vector.load %arg7[%c0_23, %c0_24] : memref<2x16xf32, #tpu.memory_space<vmem>>, vector<2x16xf32>
    tpu.vector_store %arg7[%c0_23, %c0_24], %35 {strides = array<i32>} : memref<2x16xf32, #tpu.memory_space<vmem>>, vector<2x16xf32>,
    return
  }
  func.func @transform_0(%arg0: i32) -> (i32, i32) {
    %c0_i32 = arith.constant 0 : i32
    %c0_i32_0 = arith.constant 0 : i32
    return %arg0, %c0_i32 : i32, i32
  }
  func.func @transform_1(%arg0: i32) -> (i32, i32, i32) {
    %c0_i32 = arith.constant 0 : i32
    %c0_i32_0 = arith.constant 0 : i32
    %c0_i32_1 = arith.constant 0 : i32
    return %c0_i32, %arg0, %c0_i32_0 : i32, i32, i32
  }
  func.func @transform_2(%arg0: i32) -> (i32, i32) {
    %c0_i32 = arith.constant 0 : i32
    %c0_i32_0 = arith.constant 0 : i32
    return %arg0, %c0_i32 : i32, i32
  }
  func.func @transform_3(%arg0: i32) -> (i32, i32) {
    %c0_i32 = arith.constant 0 : i32
    %c0_i32_0 = arith.constant 0 : i32
    %c0_i32_1 = arith.constant 0 : i32
    return %c0_i32, %c0_i32_0 : i32, i32
  }
  func.func @transform_4(%arg0: i32) -> (i32, i32) {
    %c0_i32 = arith.constant 0 : i32
    %c0_i32_0 = arith.constant 0 : i32
    %c0_i32_1 = arith.constant 0 : i32
    return %c0_i32, %c0_i32_0 : i32, i32
  }
  func.func @transform_5(%arg0: i32) -> (i32, i32) {
    %c0_i32 = arith.constant 0 : i32
    %c0_i32_0 = arith.constant 0 : i32
    %c0_i32_1 = arith.constant 0 : i32
    return %c0_i32, %c0_i32_0 : i32, i32
  }
  func.func @transform_6(%arg0: i32) -> (i32, i32) {
    %c0_i32 = arith.constant 0 : i32
    %c0_i32_0 = arith.constant 0 : i32
    return %arg0, %c0_i32 : i32, i32
  }
}

</mosaic_0001>

<bundles_post_ra>
// kernel: forward.3
= control target key start
LH: loop header
LB: loop body
LE: loop exit
PB: predicated region body
PF: predicated region fallthrough
CT: control target
= control target key end

     0   :  { %v434_v0 = vmov 0.0   ;;  %vm435_vm0 = vmmov 0   ;;  %v436_v4 = vmov 0   ;;  %v437_v6 = vmov 2   ;;  %s536_s3 = inlined_call_operand.vmem [shape: bf16[32,32], index: 3, kind: input, shape index: {}]   ;;  %s537_s2 = inlined_call_operand.vmem [shape: bf16[2,3], index: 2, kind: input, shape index: {}]   ;;  %s538_s1 = inlined_call_operand.vmem [shape: bf16[3,2,32], index: 1, kind: input, shape index: {}]   ;;  %s539_s5 = inlined_call_operand.vmem [shape: bf16[32,64], index: 5, kind: input, shape index: {}]   ;;  %s540_s4 = inlined_call_operand.vmem [shape: bf16[32,64], index: 4, kind: input, shape index: {}]   ;;  %s541_s0 = inlined_call_operand.vmem [shape: bf16[2,32], index: 0, kind: input, shape index: {}]   ;;  %s542_s6 = inlined_call_operand.vmem [shape: bf16[2,64], index: 6, kind: output, shape index: {}]  }
   0x1   :  { %374 = vmatprep.subr.bf16.mxu0 %v434_v0  ;;  %v428_v1 = vld [vmem:[%s536_s3] sm:$0xff]   ;;  %382 = vmatprep.subr.bf16.mxu1 %v434_v0  ;;  %v429_v2 = vld [vmem:[%s536_s3 + $0x8] sm:$0xff]   ;;  %vm43_vm1 = vcmask 261120   ;;  %v438_v9 = vmov 1   ;;  %v439_v13 = vmov 269488144   ;;  %v96_v15 = vlaneseq }
   0x2   :  { %378 = vmatprep.mubr.msk.bf16.mxu0 %vm435_vm0, %v434_v0  ;;  %386 = vmatprep.mubr.msk.bf16.mxu1 %vm435_vm0, %v434_v0  ;;  %v28_v3 = vld [vmem:[%s537_s2] sm:$0x1]  ;;  %v349_v8 = vld [vmem:[%s538_s1 + $0x1] sm:$0x1]  ;;  %v351_v10 = vld [vmem:[%s538_s1 + $0x2] sm:$0x1]  ;;  %v94_v14 = vunpack.c.l.s4 %v439_v13 }
   0x3   :  { %375 = vmatpush3.bf16.msra.mxu0 %v428_v1  ;;  %383 = vmatpush3.bf16.msra.mxu1 %v428_v1  ;;  %v29_v5 = vunpack.c.l.bf16 %v28_v3  ;;  %v30_v7 = vld [vmem:[%s538_s1] sm:$0x1]  ;;  %v431_v12 = vld [vmem:[%s539_s5 + $0x8] sm:$0xff]   ;;  %v97_v18 = vshrl.u32 %v96_v15, 7  ;;  %vm340_vm2 = vcmask 516096  }
   0x4   :  { %376 = vmatprep.subr.bf16.mxu0 %v434_v0  ;;  %384 = vmatprep.subr.bf16.mxu1 %v434_v0  ;;  %v430_v11 = vld [vmem:[%s539_s5] sm:$0xff]   ;;  %v95_v17 = vunpack.c.0.s8 %v94_v14  ;;  %v433_v47 = vld [vmem:[%s540_s4 + $0x8] sm:$0xff]  }
   0x5   :  { %424 = vset.pattern.permute.xlu0 %v436_v4  ;;  %426 = vset.pattern.permute.xlu1 %v437_v6  ;;  %v432_v45 = vld [vmem:[%s540_s4] sm:$0xff]  }
   0x6   :  { %90 = vperm.xlu0 %424, %v29_v5   ;;  %207 = vperm.xlu1 %426, %v29_v5   ;;  %v98_v19 = vsub.s32 %v95_v17, %v97_v18  ;;  %v219_v48 = vld [vmem:[%s541_s0] sm:$0x1] }
   0x7   :  { %377 = vmatpush3.bf16.msra.mxu0 %v429_v2  ;;  %385 = vmatpush3.bf16.msra.mxu1 %v429_v2 }
   0x8   :  { %390 = vmatprep.subr.bf16.mxu0 %v434_v0  ;;  %398 = vmatprep.subr.bf16.mxu1 %v434_v0 }
   0xa   :  { %379 = vmatmul.mubr.msk.bf16.vlgmr.msra.gmra.mrb[0].mxu0 %vm43_vm1, %v30_v7  ;;  %387 = vmatmul.mubr.msk.bf16.vlgmr.msra.gmra.mrb[0].mxu1 %vm43_vm1, %v349_v8 }
   0xb   :  { %391 = vmatpush3.bf16.msra.mxu0 %v428_v1  ;;  %394 = vmatprep.mubr.msk.bf16.mxu0 %vm435_vm0, %v434_v0 }
   0xc   :  { %392 = vmatprep.subr.bf16.mxu0 %v434_v0  ;;  %425 = vset.pattern.permute.xlu0 %v438_v9 }
   0xd   :  { %148 = vperm.xlu0 %425, %v29_v5   ;;  %402 = vmatprep.mubr.msk.bf16.mxu1 %vm435_vm0, %v434_v0 }
   0xe   :  { %399 = vmatpush3.bf16.msra.mxu1 %v430_v11 }
   0xf   :  { %393 = vmatpush3.bf16.msra.mxu0 %v429_v2  ;;  %400 = vmatprep.subr.bf16.mxu1 %v434_v0 }
  0x11   :  { %427 = vset.pattern.permute.xlu0 %v437_v6 }
  0x12   :  { %395 = vmatmul.mubr.msk.bf16.vlgmr.msra.gmra.mrb[4].mxu0 %vm43_vm1, %v351_v10  ;;  %401 = vmatpush3.bf16.msra.mxu1 %v431_v12 }
  0x13   :  { %406 = vmatprep.subr.bf16.mxu1 %v434_v0 }
  0x85   :  { %v91_v16 = vpop.permute.xlu0 %90  ;;  %v208_v35 = vpop.permute.xlu1 %207 }
  0x86   :  { %v99_v21 = vrot.slane %v91_v16, %v98_v19  ;;  %v216_v37 = vrot.slane %v208_v35, %v98_v19 }
  0x8c   :  { %v149_v20 = vpop.permute.xlu0 %148 }
  0x8d   :  { %v157_v22 = vrot.slane %v149_v20, %v98_v19 }
  0xdd   :  { %v81_v23 = vpop.f32.mrb[0].mxu0  ;;  %v140_v24 = vpop.f32.mrb[0].mxu1 }
  0xde   :  { %v87_v25 = vmax.f32 %v81_v23, 0.0  ;;  %v380_v26 = vpop.f32.mrb[1].mxu0  ;;  %v146_v27 = vmax.f32 %v140_v24, 0.0  ;;  %v388_v28 = vpop.f32.mrb[1].mxu1 }
  0xdf   :  { %v84_v29 = vpop.f32.mrb[2].mxu0  ;;  %v143_v30 = vpop.f32.mrb[2].mxu1 }
  0xe0   :  { %v100_v31 = vmul.f32 %v99_v21, %v87_v25  ;;  %v158_v32 = vmul.f32 %v157_v22, %v146_v27  ;;  %v381_v33 = vpop.f32.mrb[3].mxu0  ;;  %v389_v34 = vpop.f32.mrb[3].mxu1 }
  0xe2   :  { %v159_v36 = vmax.f32 %v100_v31, %v158_v32 }
  0xe5   :  { %v199_v38 = vpop.f32.mrb[4].mxu0 }
  0xe6   :  { %v205_v39 = vmax.f32 %v199_v38, 0.0  ;;  %v396_v40 = vpop.f32.mrb[5].mxu0 }
  0xe7   :  { %v202_v41 = vpop.f32.mrb[6].mxu0 }
  0xe8   :  { %v217_v42 = vmul.f32 %v216_v37, %v205_v39  ;;  %v397_v43 = vpop.f32.mrb[7].mxu0 }
  0xea   :  { %v218_v44 = vmax.f32 %v159_v36, %v217_v42 }
  0xec   :  { %v224_v46 = vpack.c.bf16 %v218_v44, %v218_v44 }
  0xee   :  { %403 = vmatmul.mubr.msk.bf16.vlgmr.msra.gmra.mrb[4].mxu1 %vm43_vm1, %v224_v46 }
  0xef   :  { %407 = vmatpush3.bf16.msra.mxu1 %v432_v45  ;;  %410 = vmatprep.mubr.msk.bf16.mxu1 %vm435_vm0, %v434_v0 }
  0xf0   :  { %408 = vmatprep.subr.bf16.mxu1 %v434_v0 }
  0xf3   :  { %409 = vmatpush3.bf16.msra.mxu1 %v433_v47 }
  0xfa   :  { %411 = vmatmul.mubr.msk.bf16.vlgmr.msra.gmra.mrb[4].mxu1 %vm43_vm1, %v219_v48 }
 0x1cd   :  { %v333_v49 = vpop.f32.mrb[4].mxu1 }
 0x1ce   :  { %v339_v50 = vpack.c.bf16 %v333_v49, %v333_v49  ;;  %v412_v51 = vpop.f32.mrb[5].mxu1 }
 0x1cf   :  { %v336_v52 = vpop.f32.mrb[6].mxu1 }
 0x1d0   :  { %341 = vst.msk [vmem:[%s542_s6] sm:$0x1] %vm340_vm2, %v339_v50  ;;  %v413_v53 = vpop.f32.mrb[7].mxu1 }

// kernel: forward.4
= control target key start
LH: loop header
LB: loop body
LE: loop exit
PB: predicated region body
PF: predicated region fallthrough
CT: control target
= control target key end

     0   :  { %v344_v0 = vmov 0.0   ;;  %vm345_vm0 = vmmov 0   ;;  %v346_v2 = vmov 0   ;;  %vm43_vm1 = vcmask 261120   ;;  %s424_s3 = inlined_call_operand.vmem [shape: bf16[32,32], index: 3, kind: input, shape index: {}]   ;;  %s425_s2 = inlined_call_operand.vmem [shape: bf16[6,2], index: 2, kind: input, shape index: {}]   ;;  %s426_s1 = inlined_call_operand.vmem [shape: bf16[2,6,32], index: 1, kind: input, shape index: {}]   ;;  %s427_s5 = inlined_call_operand.vmem [shape: bf16[32,64], index: 5, kind: input, shape index: {}]   ;;  %s428_s4 = inlined_call_operand.vmem [shape: bf16[32,64], index: 4, kind: input, shape index: {}]   ;;  %s429_s0 = inlined_call_operand.vmem [shape: bf16[6,32], index: 0, kind: input, shape index: {}]   ;;  %s430_s6 = inlined_call_operand.vmem [shape: bf16[6,64], index: 6, kind: output, shape index: {}]  }
   0x1   :  { %296 = vmatprep.subr.bf16.mxu1 %v344_v0  ;;  %v338_v1 = vld [vmem:[%s424_s3] sm:$0xff]   ;;  %300 = vmatprep.mubr.msk.bf16.mxu1 %vm345_vm0, %v344_v0  ;;  %v339_v3 = vld [vmem:[%s424_s3 + $0x8] sm:$0xff]   ;;  %v347_v7 = vmov 1   ;;  %vm267_vm2 = vcmask 518144  }
   0x2   :  { %336 = vset.pattern.permute.xlu0 %v346_v2  ;;  %312 = vmatprep.subr.bf16.mxu0 %v344_v0  ;;  %v28_v4 = vld [vmem:[%s425_s2] sm:$0x7]  ;;  %v276_v8 = vld [vmem:[%s426_s1 + $0x4] sm:$0x7]  ;;  %v341_v10 = vld [vmem:[%s427_s5 + $0x8] sm:$0xff]  }
   0x3   :  { %297 = vmatpush3.bf16.msra.mxu1 %v338_v1  ;;  %316 = vmatprep.mubr.msk.bf16.mxu0 %vm345_vm0, %v344_v0  ;;  %v29_v5 = vunpack.c.l.bf16 %v28_v4  ;;  %v30_v6 = vld [vmem:[%s426_s1] sm:$0x7]  ;;  %v343_v28 = vld [vmem:[%s428_s4 + $0x8] sm:$0xff]  }
   0x4   :  { %298 = vmatprep.subr.bf16.mxu1 %v344_v0  ;;  %v340_v9 = vld [vmem:[%s427_s5] sm:$0xff]  }
   0x5   :  { %90 = vperm.xlu0 %336, %v29_v5   ;;  %313 = vmatpush3.bf16.msra.mxu0 %v340_v9  ;;  %v342_v26 = vld [vmem:[%s428_s4] sm:$0xff]  }
   0x6   :  { %314 = vmatprep.subr.bf16.mxu0 %v344_v0  ;;  %v146_v29 = vld [vmem:[%s429_s0] sm:$0x7] }
   0x7   :  { %299 = vmatpush3.bf16.msra.mxu1 %v339_v3 }
   0x8   :  { %304 = vmatprep.subr.bf16.mxu1 %v344_v0 }
   0x9   :  { %337 = vset.pattern.permute.xlu0 %v347_v7  ;;  %315 = vmatpush3.bf16.msra.mxu0 %v341_v10 }
   0xa   :  { %301 = vmatmul.mubr.msk.bf16.vlgmr.msra.gmra.mrb[0].mxu1 %vm43_vm1, %v30_v6  ;;  %141 = vperm.xlu0 %337, %v29_v5  }
   0xb   :  { %305 = vmatpush3.bf16.msra.mxu1 %v338_v1  ;;  %308 = vmatprep.mubr.msk.bf16.mxu1 %vm345_vm0, %v344_v0 }
   0xc   :  { %306 = vmatprep.subr.bf16.mxu1 %v344_v0  ;;  %320 = vmatprep.subr.bf16.mxu0 %v344_v0 }
   0xf   :  { %307 = vmatpush3.bf16.msra.mxu1 %v339_v3 }
  0x12   :  { %309 = vmatmul.mubr.msk.bf16.vlgmr.msra.gmra.mrb[4].mxu1 %vm43_vm1, %v276_v8 }
  0x84   :  { %v91_v15 = vpop.permute.xlu0 %90 }
  0x89   :  { %v142_v18 = vpop.permute.xlu0 %141 }
  0xdd   :  { %v81_v11 = vpop.f32.mrb[0].mxu1 }
  0xde   :  { %v302_v12 = vpop.f32.mrb[1].mxu1  ;;  %v87_v16 = vmax.f32 %v81_v11, 0.0 }
  0xdf   :  { %v84_v13 = vpop.f32.mrb[2].mxu1 }
  0xe0   :  { %v303_v14 = vpop.f32.mrb[3].mxu1  ;;  %v93_v22 = vmul.f32 %v91_v15, %v87_v16 }
  0xe5   :  { %v133_v17 = vpop.f32.mrb[4].mxu1 }
  0xe6   :  { %v139_v19 = vmax.f32 %v133_v17, 0.0  ;;  %v310_v20 = vpop.f32.mrb[5].mxu1 }
  0xe7   :  { %v136_v21 = vpop.f32.mrb[6].mxu1 }
  0xe8   :  { %v144_v23 = vmul.f32 %v142_v18, %v139_v19  ;;  %v311_v24 = vpop.f32.mrb[7].mxu1 }
  0xea   :  { %v145_v25 = vmax.f32 %v93_v22, %v144_v23 }
  0xec   :  { %v151_v27 = vpack.c.bf16 %v145_v25, %v145_v25 }
  0xee   :  { %317 = vmatmul.mubr.msk.bf16.vlgmr.msra.gmra.mrb[0].mxu0 %vm43_vm1, %v151_v27 }
  0xef   :  { %321 = vmatpush3.bf16.msra.mxu0 %v342_v26  ;;  %324 = vmatprep.mubr.msk.bf16.mxu0 %vm345_vm0, %v344_v0 }
  0xf0   :  { %322 = vmatprep.subr.bf16.mxu0 %v344_v0 }
  0xf3   :  { %323 = vmatpush3.bf16.msra.mxu0 %v343_v28 }
  0xfa   :  { %325 = vmatmul.mubr.msk.bf16.vlgmr.msra.gmra.mrb[0].mxu0 %vm43_vm1, %v146_v29 }
 0x1cd   :  { %v260_v30 = vpop.f32.mrb[0].mxu0 }
 0x1ce   :  { %v266_v31 = vpack.c.bf16 %v260_v30, %v260_v30  ;;  %v326_v32 = vpop.f32.mrb[1].mxu0 }
 0x1cf   :  { %v263_v33 = vpop.f32.mrb[2].mxu0 }
 0x1d0   :  { %268 = vst.msk [vmem:[%s430_s6] sm:$0x7] %vm267_vm2, %v266_v31  ;;  %v327_v34 = vpop.f32.mrb[3].mxu0 }

// kernel: forward.5
= control target key start
LH: loop header
LB: loop body
LE: loop exit
PB: predicated region body
PF: predicated region fallthrough
CT: control target
= control target key end

     0   :  { %v534_v1 = vmov 0.0   ;;  %vm535_vm0 = vmmov 0   ;;  %v536_v3 = vmov 0   ;;  %v537_v7 = vmov 2   ;;  %s665_s0 = inlined_call_operand.vmem [shape: bf16[2,64], index: 0, kind: input, shape index: {}]   ;;  %s666_s1 = inlined_call_operand.vmem [shape: bf16[3,2,64], index: 1, kind: input, shape index: {}]   ;;  %s667_s2 = inlined_call_operand.vmem [shape: bf16[2,3], index: 2, kind: input, shape index: {}]   ;;  %s668_s3 = inlined_call_operand.vmem [shape: bf16[64,32], index: 3, kind: input, shape index: {}]   ;;  %s669_s4 = inlined_call_operand.vmem [shape: bf16[64,16], index: 4, kind: input, shape index: {}]   ;;  %s670_s5 = inlined_call_operand.vmem [shape: bf16[32,16], index: 5, kind: input, shape index: {}]   ;;  %s671_s6 = inlined_call_operand.hbm [shape: f32[2,16], index: 6, kind: output, shape index: {}]  }
   0x1   :  { %v500_v0 = vld [vmem:[%s668_s3] sm:$0xff]   ;;  %429 = vmatprep.subr.bf16.mxu0 %v534_v1  ;;  %441 = vmatprep.subr.bf16.mxu1 %v534_v1  ;;  %v501_v2 = vld [vmem:[%s668_s3 + $0x8] sm:$0xff]   ;;  %v502_v5 = vld [vmem:[%s668_s3 + $0x10] sm:$0xff]  }
   0x2   :  { %430 = vmatpush3.bf16.msra.mxu0 %v500_v0  ;;  %442 = vmatpush3.bf16.msra.mxu1 %v500_v0  ;;  %v33_v4 = vld [vmem:[%s667_s2] sm:$0x1]  ;;  %v503_v8 = vld [vmem:[%s668_s3 + $0x18] sm:$0xff]  }
   0x3   :  { %431 = vmatprep.subr.bf16.mxu0 %v534_v1  ;;  %443 = vmatprep.subr.bf16.mxu1 %v534_v1  ;;  %v34_v6 = vunpack.c.l.bf16 %v33_v4 }
   0x4   :  { %437 = vmatprep.mubr.msk.bf16.mxu0 %vm535_vm0, %v534_v1  ;;  %449 = vmatprep.mubr.msk.bf16.mxu1 %vm535_vm0, %v534_v1 }
   0x5   :  { %496 = vset.pattern.permute.xlu0 %v536_v3  ;;  %498 = vset.pattern.permute.xlu1 %v537_v7 }
   0x6   :  { %432 = vmatpush3.bf16.msra.mxu0 %v501_v2  ;;  %444 = vmatpush3.bf16.msra.mxu1 %v501_v2 }
   0x7   :  { %433 = vmatprep.subr.bf16.mxu0 %v534_v1  ;;  %445 = vmatprep.subr.bf16.mxu1 %v534_v1 }
   0x8   :  { %107 = vperm.xlu0 %496, %v34_v6   ;;  %224 = vperm.xlu1 %498, %v34_v6  }
   0xa   :  { %434 = vmatpush3.bf16.msra.mxu0 %v502_v5  ;;  %446 = vmatpush3.bf16.msra.mxu1 %v502_v5 }
   0xb   :  { %11 = vsyncpa [#allocation3], 0  ;;  %435 = vmatprep.subr.bf16.mxu0 %v534_v1  ;;  %447 = vmatprep.subr.bf16.mxu1 %v534_v1  ;;  %v538_v9 = vmov 1   ;;  %v35_v10 = vld [vmem:[%s666_s1] sm:$0x1]  ;;  %vm60_vm1 = vcmask 523264   ;;  %v113_v17 = vlaneseq }
   0xc   :  { %497 = vset.pattern.permute.xlu0 %v538_v9  ;;  %v394_v11 = vld [vmem:[%s666_s1 + $0x1] sm:$0x1]  ;;  %v396_v12 = vld [vmem:[%s666_s1 + $0x2] sm:$0x1]  ;;  %v505_v14 = vld [vmem:[%s670_s5 + $0x8] sm:$0xff]   ;;  %vm262_vm2 = vcmask 261120  }
   0xd   :  { %165 = vperm.xlu0 %497, %v34_v6   ;;  %v504_v13 = vld [vmem:[%s670_s5] sm:$0xff]   ;;  %v539_v15 = vmov 269488144   ;;  %v114_v20 = vshrl.u32 %v113_v17, 7  ;;  %v507_v49 = vld [vmem:[%s669_s4 + $0x8] sm:$0xff]   ;;  %v508_v50 = vld [vmem:[%s669_s4 + $0x10] sm:$0xff]  }
   0xe   :  { %436 = vmatpush3.bf16.msra.mxu0 %v503_v8  ;;  %448 = vmatpush3.bf16.msra.mxu1 %v503_v8  ;;  %v111_v16 = vunpack.c.l.s4 %v539_v15  ;;  %v506_v47 = vld [vmem:[%s669_s4] sm:$0xff]   ;;  %v509_v51 = vld [vmem:[%s669_s4 + $0x18] sm:$0xff]   ;;  %s540_s23 = smov [#allocation2]   ;;  %vm373_vm3 = vcmask 123904  }
   0xf   :  { %453 = vmatprep.subr.bf16.mxu0 %v534_v1  ;;  %465 = vmatprep.subr.bf16.mxu1 %v534_v1  ;;  %v236_v52 = vld [vmem:[%s665_s0] sm:$0x1]  ;;  %s381_s24 = sshll.u32 %s540_s23, 4  ;;  %s382_s24 = int_to_ptr.vmem [resolvable:$true] %s381_s24 }
  0x10   :  { %v112_v19 = vunpack.c.0.s8 %v111_v16  ;;  %s510_s25 = scalar_lea.vmem %s382_s24, 32  ;;  %p515_p1 = scmp.lt.s32.totalorder %s382_s24, %s382_s24 }
  0x11   :  { %438 = vmatmul.mubr.msk.bf16.vlgmr.msra.gmra.mrb[0].mxu0 %vm60_vm1, %v35_v10  ;;  %450 = vmatmul.mubr.msk.bf16.vlgmr.msra.gmra.mrb[0].mxu1 %vm60_vm1, %v394_v11  ;;  %p511_p0 = scmp.ne.s32.totalorder %s382_s24, %s510_s25  ;;  %p516_p2 = scmp.lt.s32.totalorder %s510_s25, %s510_s25 }
  0x12   :  { %454 = vmatpush3.bf16.msra.mxu0 %v500_v0  ;;  %461 = vmatprep.mubr.msk.bf16.mxu0 %vm535_vm0, %v534_v1  ;;  %v115_v21 = vsub.s32 %v112_v19, %v114_v20 }
  0x13   :  { %455 = vmatprep.subr.bf16.mxu0 %v534_v1  ;;  %469 = vmatprep.mubr.msk.bf16.mxu1 %vm535_vm0, %v534_v1  ;;  %p517_p3 = por %p516_p2, %p515_p1 }
  0x14   :  { %499 = vset.pattern.permute.xlu0 %v537_v7  ;;  %466 = vmatpush3.bf16.msra.mxu1 %v504_v13 }
  0x15   :  { %467 = vmatprep.subr.bf16.mxu1 %v534_v1  ;;  %p518_p4 = pnand %p517_p3, %p511_p0 }
  0x16   :  { %456 = vmatpush3.bf16.msra.mxu0 %v501_v2 }
  0x17   :  { %457 = vmatprep.subr.bf16.mxu0 %v534_v1 }
  0x18   :  { %468 = vmatpush3.bf16.msra.mxu1 %v505_v14 }
  0x19   :  { %473 = vmatprep.subr.bf16.mxu1 %v534_v1 }
  0x1a   :  { %458 = vmatpush3.bf16.msra.mxu0 %v502_v5 }
  0x1b   :  { %459 = vmatprep.subr.bf16.mxu0 %v534_v1 }
  0x1e   :  { %460 = vmatpush3.bf16.msra.mxu0 %v503_v8 }
  0x21   :  { %462 = vmatmul.mubr.msk.bf16.vlgmr.msra.gmra.mrb[4].mxu0 %vm60_vm1, %v396_v12 }
  0x87   :  { %v108_v18 = vpop.permute.xlu0 %107  ;;  %v225_v38 = vpop.permute.xlu1 %224 }
  0x88   :  { %v116_v23 = vrot.slane %v108_v18, %v115_v21  ;;  %v233_v39 = vrot.slane %v225_v38, %v115_v21 }
  0x8c   :  { %v166_v22 = vpop.permute.xlu0 %165 }
  0x8d   :  { %v174_v24 = vrot.slane %v166_v22, %v115_v21 }
  0xe4   :  { %v98_v25 = vpop.f32.mrb[0].mxu0  ;;  %v157_v26 = vpop.f32.mrb[0].mxu1 }
  0xe5   :  { %v104_v27 = vmax.f32 %v98_v25, 0.0  ;;  %v439_v28 = vpop.f32.mrb[1].mxu0  ;;  %v163_v29 = vmax.f32 %v157_v26, 0.0  ;;  %v451_v30 = vpop.f32.mrb[1].mxu1 }
  0xe6   :  { %v101_v31 = vpop.f32.mrb[2].mxu0  ;;  %v160_v32 = vpop.f32.mrb[2].mxu1 }
  0xe7   :  { %v117_v33 = vmul.f32 %v116_v23, %v104_v27  ;;  %v175_v34 = vmul.f32 %v174_v24, %v163_v29  ;;  %v440_v35 = vpop.f32.mrb[3].mxu0  ;;  %v452_v36 = vpop.f32.mrb[3].mxu1 }
  0xe9   :  { %v176_v37 = vmax.f32 %v117_v33, %v175_v34 }
  0xf4   :  { %v216_v40 = vpop.f32.mrb[4].mxu0 }
  0xf5   :  { %v222_v41 = vmax.f32 %v216_v40, 0.0  ;;  %v463_v42 = vpop.f32.mrb[5].mxu0 }
  0xf6   :  { %v219_v43 = vpop.f32.mrb[6].mxu0 }
  0xf7   :  { %v234_v44 = vmul.f32 %v233_v39, %v222_v41  ;;  %v464_v45 = vpop.f32.mrb[7].mxu0 }
  0xf9   :  { %v235_v46 = vmax.f32 %v176_v37, %v234_v44 }
  0xfb   :  { %v245_v48 = vpack.c.bf16 %v235_v46, %v235_v46 }
  0xfd   :  { %470 = vmatmul.mubr.msk.bf16.vlgmr.msra.gmra.mrb[4].mxu1 %vm262_vm2, %v245_v48 }
  0xfe   :  { %474 = vmatpush3.bf16.msra.mxu1 %v506_v47  ;;  %481 = vmatprep.mubr.msk.bf16.mxu1 %vm535_vm0, %v534_v1 }
  0xff   :  { %475 = vmatprep.subr.bf16.mxu1 %v534_v1 }
 0x102   :  { %476 = vmatpush3.bf16.msra.mxu1 %v507_v49 }
 0x103   :  { %477 = vmatprep.subr.bf16.mxu1 %v534_v1 }
 0x106   :  { %478 = vmatpush3.bf16.msra.mxu1 %v508_v50 }
 0x107   :  { %479 = vmatprep.subr.bf16.mxu1 %v534_v1 }
 0x10a   :  { %480 = vmatpush3.bf16.msra.mxu1 %v509_v51 }
 0x10d   :  { %482 = vmatmul.mubr.msk.bf16.vlgmr.msra.gmra.mrb[4].mxu1 %vm60_vm1, %v236_v52 }
 0x1e0   :  { %v367_v53 = vpop.f32.mrb[4].mxu1 }
 0x1e1   :  { %374 = vst.msk [vmem:[#allocation2] sm:$0x3] %vm373_vm3, %v367_v53  ;;  %v483_v54 = vpop.f32.mrb[5].mxu1 }
 0x1e2   :  { %v370_v55 = vpop.f32.mrb[6].mxu1 }
 0x1e3   :  { %521 = shalt.err (!%p518_p4)
}
 0x1e4   :  { %s522_s0 = scalar_lea.hbm %s671_s6, 32 }
 0x1e5   :  { %p523_p5 = scmp.ne.s32.totalorder %s671_s6, %s522_s0  ;;  %p526_p6 = scmp.lt.u32.totalorder %s522_s0, %s671_s6 }
 0x1e7   :  { %p528_p7 = pnand %p526_p6, %p523_p5 }
 0x1e9   :  { %531 = shalt.err (!%p528_p7)
}
 0x1ea   :  { %384 = dma.vmem_to_hbm [thread:$0]  %s382_s24, 32, %s671_s6, [#allocation3]   ;;  %v484_v56 = vpop.f32.mrb[7].mxu1 }
 0x1eb   :  { %532 = dma.done.wait [#allocation3], 32  }
 0x1ec   :  { %533 = vsyncadd [#allocation3], 4294967264 }
 0x1ed   :  { %388 = vsyncpa [#allocation3], 1 }

</bundles_post_ra>
